<compile_context>
chip_gen: v6e
topology: v6e:2x2x1
jax: 0.10.0
libtpu: 0.0.40
codegen_flags: <defaults>
</compile_context>

<pallas_src>
import jax
import jax.numpy as jnp
from jax.experimental import pallas as pl
from jax.experimental.pallas import tpu as pltpu

INPUT_SIZE = 1
OUTPUT_SIZE = 9
HIDDEN = (5, 10, 20, 5)
DIMS = (INPUT_SIZE,) + HIDDEN + (OUTPUT_SIZE,)   # (1, 5, 10, 20, 5, 9)
NUM_LAYERS = len(DIMS) - 1                       # 5

BLOCK_B = 1024                                   # batch tile = lane axis; multiple of 128
_TOTAL_OUT_ROWS = sum(DIMS[1:])                  # 49 rows of packed weights
SLAB_ROWS = -(-_TOTAL_OUT_ROWS // 8) * 8         # pad to sublane multiple -> 56
SLAB_COLS = 128                                  # one full lane tile


def _cgnn_kernel(p_ref, x_ref, out_ref):
    """Fused 5-layer MLP in feature-major layout.

    p_ref  : (SLAB_ROWS, 128)  packed params.  Layer li occupies rows
             [off_li : off_li + out_li); cols [0:in_li) hold W (PyTorch (out,in)
             layout), col in_li holds the bias.
    x_ref  : (1, Bb)            input features, batch in lanes.
    out_ref: (OUTPUT_SIZE, Bb)  output features, batch in lanes.
    """
    h = x_ref[...]                                    # (1, Bb)
    bb = h.shape[1]

    row = 0
    for li in range(NUM_LAYERS):
        fin, fout = DIMS[li], DIMS[li + 1]

        # bias column -> (fout, 1), lane-broadcast once per layer (outside k-loop).
        bias = p_ref[row:row + fout, fin:fin + 1]     # (fout, 1)
        acc = jnp.broadcast_to(bias, (fout, bb))      # (fout, Bb)

        # Tiny-K contraction as unrolled VPU broadcast-FMAs (no MXU).
        for k in range(fin):
            wk = p_ref[row:row + fout, k:k + 1]       # (fout, 1)  lane-broadcast
            acc = acc + wk * h[k:k + 1, :]            # (1, Bb)    sublane-broadcast
        row += fout

        h = jnp.maximum(acc, 0.0) if li < NUM_LAYERS - 1 else acc

    out_ref[...] = h.astype(out_ref.dtype)            # (OUTPUT_SIZE, Bb), lane-dense store


def pack_params(params):
    """Pack all PyTorch-layout (out, in) weights and (out,) biases into one slab."""
    slab = jnp.zeros((SLAB_ROWS, SLAB_COLS), jnp.float32)
    row = 0
    for li in range(NUM_LAYERS):
        w = params[f"w{li + 1}"]                      # (out, in)
        b = params[f"b{li + 1}"]                      # (out,)
        fout, fin = w.shape
        slab = slab.at[row:row + fout, 0:fin].set(w)
        slab = slab.at[row:row + fout, fin].set(b)
        row += fout
    return slab


def cgnn_forward(x, slab, block_b=BLOCK_B):
    """x: (B, INPUT_SIZE) f32, slab: packed params -> (B, OUTPUT_SIZE) f32."""
    B, F = x.shape
    assert F == INPUT_SIZE

    # Tile on the lane axis: shrink for tiny batches (still a multiple of 128 lanes)
    # so padding lanes stay cheap; cap at BLOCK_B for big batches.
    bb = min(block_b, pl.cdiv(B, 128) * 128)
    bp = pl.cdiv(B, bb) * bb

    # Feature-major (1, bp) input, zero-padded on the lane axis.
    xt = jnp.zeros((INPUT_SIZE, bp), jnp.float32).at[:, :B].set(x.T)

    grid = (bp // bb,)

    out_fm = pl.pallas_call(
        _cgnn_kernel,
        out_shape=jax.ShapeDtypeStruct((OUTPUT_SIZE, bp), jnp.float32),
        grid_spec=pltpu.PrefetchScalarGridSpec(
            num_scalar_prefetch=0,
            grid=grid,
            in_specs=[
                # Single packed parameter slab, resident (constant block) every step.
                pl.BlockSpec((SLAB_ROWS, SLAB_COLS), lambda i: (0, 0)),
                # Input features, batch tiled along lanes.
                pl.BlockSpec((INPUT_SIZE, bb), lambda i: (0, i)),
            ],
            out_specs=pl.BlockSpec((OUTPUT_SIZE, bb), lambda i: (0, i)),
        ),
        compiler_params=pltpu.CompilerParams(
            dimension_semantics=("parallel",)),   # >=2 steps -> megacore on v7x
    )(slab, xt)

    return out_fm[:, :B].T                            # back to PyTorch (B, OUTPUT_SIZE)


def init_params(key):
    """PyTorch nn.Linear-style init: W (out, in), b (out,), uniform +/- 1/sqrt(fan_in)."""
    params = {}
    for li in range(NUM_LAYERS):
        fan_in, fan_out = DIMS[li], DIMS[li + 1]
        key, kw, kb = jax.random.split(key, 3)
        bound = 1.0 / (fan_in ** 0.5)
        params[f"w{li + 1}"] = jax.random.uniform(
            kw, (fan_out, fan_in), jnp.float32, -bound, bound)
        params[f"b{li + 1}"] = jax.random.uniform(
            kb, (fan_out,), jnp.float32, -bound, bound)
    return params


def cgnn_reference(x, params):
    h = x
    for li in range(NUM_LAYERS):
        w = params[f"w{li + 1}"]
        b = params[f"b{li + 1}"]
        h = h @ w.T + b
        if li < NUM_LAYERS - 1:
            h = jnp.maximum(h, 0.0)
    return h


if __name__ == "__main__":
    key = jax.random.PRNGKey(0)
    kp, kx = jax.random.split(key)

    params = init_params(kp)
    slab = pack_params(params)

    batch = 37                                        # small, deliberately non-round; wrapper pads
    x = jax.random.normal(kx, (batch, INPUT_SIZE), jnp.float32)

    out = jax.block_until_ready(cgnn_forward(x, slab))
    ref = cgnn_reference(x, params)

    assert out.shape == (batch, OUTPUT_SIZE)
    assert jnp.allclose(out, ref, atol=1e-5, rtol=1e-5), "mismatch vs reference"

    print("KERNEL_OK")
</pallas_src>

<mosaic_0001>
module attributes {stable_mosaic.version = 11 : i64} {
  func.func @_cgnn_kernel(%arg0: i32, %arg1: memref<56x128xf32, #tpu.memory_space<vmem>>, %arg2: memref<1x128xf32, #tpu.memory_space<vmem>>, %arg3: memref<9x128xf32, #tpu.memory_space<vmem>>) attributes {dimension_semantics = [#tpu.dimension_semantics<parallel>], iteration_bounds = array<i64: 1>, scalar_prefetch = 0 : i64, scratch_operands = 0 : i64, tpu.core_type = #tpu.core_type<tc>, window_params = [{pipeline_mode = #tpu.pipeline_mode<synchronous>, transform_indices = @transform_0, window_bounds = array<i64: 56, 128>}, {transform_indices = @transform_1, window_bounds = array<i64: 1, 128>}, {transform_indices = @transform_2, window_bounds = array<i64: 9, 128>}]} {
    %c0 = arith.constant 0 : index
    %c0_0 = arith.constant 0 : index
    %0 = vector.load %arg2[%c0, %c0_0] : memref<1x128xf32, #tpu.memory_space<vmem>>, vector<1x128xf32>
    %c0_1 = arith.constant 0 : index
    %c1 = arith.constant 1 : index
    %1 = vector.load %arg1[%c0_1, %c1] : memref<56x128xf32, #tpu.memory_space<vmem>>, vector<5x1xf32>
    %2 = vector.shape_cast %1 : vector<5x1xf32> to vector<5x1xf32>
    %3 = vector.broadcast %2 : vector<5x1xf32> to vector<5x128xf32>
    %c0_2 = arith.constant 0 : index
    %c0_3 = arith.constant 0 : index
    %4 = vector.load %arg1[%c0_2, %c0_3] : memref<56x128xf32, #tpu.memory_space<vmem>>, vector<5x1xf32>
    %5 = vector.broadcast %4 : vector<5x1xf32> to vector<5x128xf32>
    %6 = vector.broadcast %0 : vector<1x128xf32> to vector<5x128xf32>
    %7 = arith.mulf %5, %6 : vector<5x128xf32>
    %8 = arith.addf %3, %7 : vector<5x128xf32>
    %cst = arith.constant 0.000000e+00 : f32
    %9 = vector.broadcast %cst : f32 to vector<5x128xf32>
    %10 = arith.maximumf %8, %9 : vector<5x128xf32>
    %c5 = arith.constant 5 : index
    %c5_4 = arith.constant 5 : index
    %11 = vector.load %arg1[%c5, %c5_4] : memref<56x128xf32, #tpu.memory_space<vmem>>, vector<10x1xf32>
    %12 = vector.shape_cast %11 : vector<10x1xf32> to vector<10x1xf32>
    %13 = vector.broadcast %12 : vector<10x1xf32> to vector<10x128xf32>
    %c5_5 = arith.constant 5 : index
    %c0_6 = arith.constant 0 : index
    %14 = vector.load %arg1[%c5_5, %c0_6] : memref<56x128xf32, #tpu.memory_space<vmem>>, vector<10x1xf32>
    %15 = vector.extract_strided_slice %10 {offsets = [0, 0], sizes = [1, 128], strides = [1, 1]} : vector<5x128xf32> to vector<1x128xf32>
    %16 = vector.broadcast %14 : vector<10x1xf32> to vector<10x128xf32>
    %17 = vector.broadcast %15 : vector<1x128xf32> to vector<10x128xf32>
    %18 = arith.mulf %16, %17 : vector<10x128xf32>
    %19 = arith.addf %13, %18 : vector<10x128xf32>
    %c5_7 = arith.constant 5 : index
    %c1_8 = arith.constant 1 : index
    %20 = vector.load %arg1[%c5_7, %c1_8] : memref<56x128xf32, #tpu.memory_space<vmem>>, vector<10x1xf32>
    %21 = vector.extract_strided_slice %10 {offsets = [1, 0], sizes = [1, 128], strides = [1, 1]} : vector<5x128xf32> to vector<1x128xf32>
    %22 = vector.broadcast %20 : vector<10x1xf32> to vector<10x128xf32>
    %23 = vector.broadcast %21 : vector<1x128xf32> to vector<10x128xf32>
    %24 = arith.mulf %22, %23 : vector<10x128xf32>
    %25 = arith.addf %19, %24 : vector<10x128xf32>
    %c5_9 = arith.constant 5 : index
    %c2 = arith.constant 2 : index
    %26 = vector.load %arg1[%c5_9, %c2] : memref<56x128xf32, #tpu.memory_space<vmem>>, vector<10x1xf32>
    %27 = vector.extract_strided_slice %10 {offsets = [2, 0], sizes = [1, 128], strides = [1, 1]} : vector<5x128xf32> to vector<1x128xf32>
    %28 = vector.broadcast %26 : vector<10x1xf32> to vector<10x128xf32>
    %29 = vector.broadcast %27 : vector<1x128xf32> to vector<10x128xf32>
    %30 = arith.mulf %28, %29 : vector<10x128xf32>
    %31 = arith.addf %25, %30 : vector<10x128xf32>
    %c5_10 = arith.constant 5 : index
    %c3 = arith.constant 3 : index
    %32 = vector.load %arg1[%c5_10, %c3] : memref<56x128xf32, #tpu.memory_space<vmem>>, vector<10x1xf32>
    %33 = vector.extract_strided_slice %10 {offsets = [3, 0], sizes = [1, 128], strides = [1, 1]} : vector<5x128xf32> to vector<1x128xf32>
    %34 = vector.broadcast %32 : vector<10x1xf32> to vector<10x128xf32>
    %35 = vector.broadcast %33 : vector<1x128xf32> to vector<10x128xf32>
    %36 = arith.mulf %34, %35 : vector<10x128xf32>
    %37 = arith.addf %31, %36 : vector<10x128xf32>
    %c5_11 = arith.constant 5 : index
    %c4 = arith.constant 4 : index
    %38 = vector.load %arg1[%c5_11, %c4] : memref<56x128xf32, #tpu.memory_space<vmem>>, vector<10x1xf32>
    %39 = vector.extract_strided_slice %10 {offsets = [4, 0], sizes = [1, 128], strides = [1, 1]} : vector<5x128xf32> to vector<1x128xf32>
    %40 = vector.broadcast %38 : vector<10x1xf32> to vector<10x128xf32>
    %41 = vector.broadcast %39 : vector<1x128xf32> to vector<10x128xf32>
    %42 = arith.mulf %40, %41 : vector<10x128xf32>
    %43 = arith.addf %37, %42 : vector<10x128xf32>
    %cst_12 = arith.constant 0.000000e+00 : f32
    %44 = vector.broadcast %cst_12 : f32 to vector<10x128xf32>
    %45 = arith.maximumf %43, %44 : vector<10x128xf32>
    %c15 = arith.constant 15 : index
    %c10 = arith.constant 10 : index
    %46 = vector.load %arg1[%c15, %c10] : memref<56x128xf32, #tpu.memory_space<vmem>>, vector<20x1xf32>
    %47 = vector.shape_cast %46 : vector<20x1xf32> to vector<20x1xf32>
    %48 = vector.broadcast %47 : vector<20x1xf32> to vector<20x128xf32>
    %c15_13 = arith.constant 15 : index
    %c0_14 = arith.constant 0 : index
    %49 = vector.load %arg1[%c15_13, %c0_14] : memref<56x128xf32, #tpu.memory_space<vmem>>, vector<20x1xf32>
    %50 = vector.extract_strided_slice %45 {offsets = [0, 0], sizes = [1, 128], strides = [1, 1]} : vector<10x128xf32> to vector<1x128xf32>
    %51 = vector.broadcast %49 : vector<20x1xf32> to vector<20x128xf32>
    %52 = vector.broadcast %50 : vector<1x128xf32> to vector<20x128xf32>
    %53 = arith.mulf %51, %52 : vector<20x128xf32>
    %54 = arith.addf %48, %53 : vector<20x128xf32>
    %c15_15 = arith.constant 15 : index
    %c1_16 = arith.constant 1 : index
    %55 = vector.load %arg1[%c15_15, %c1_16] : memref<56x128xf32, #tpu.memory_space<vmem>>, vector<20x1xf32>
    %56 = vector.extract_strided_slice %45 {offsets = [1, 0], sizes = [1, 128], strides = [1, 1]} : vector<10x128xf32> to vector<1x128xf32>
    %57 = vector.broadcast %55 : vector<20x1xf32> to vector<20x128xf32>
    %58 = vector.broadcast %56 : vector<1x128xf32> to vector<20x128xf32>
    %59 = arith.mulf %57, %58 : vector<20x128xf32>
    %60 = arith.addf %54, %59 : vector<20x128xf32>
    %c15_17 = arith.constant 15 : index
    %c2_18 = arith.constant 2 : index
    %61 = vector.load %arg1[%c15_17, %c2_18] : memref<56x128xf32, #tpu.memory_space<vmem>>, vector<20x1xf32>
    %62 = vector.extract_strided_slice %45 {offsets = [2, 0], sizes = [1, 128], strides = [1, 1]} : vector<10x128xf32> to vector<1x128xf32>
    %63 = vector.broadcast %61 : vector<20x1xf32> to vector<20x128xf32>
    %64 = vector.broadcast %62 : vector<1x128xf32> to vector<20x128xf32>
    %65 = arith.mulf %63, %64 : vector<20x128xf32>
    %66 = arith.addf %60, %65 : vector<20x128xf32>
    %c15_19 = arith.constant 15 : index
    %c3_20 = arith.constant 3 : index
    %67 = vector.load %arg1[%c15_19, %c3_20] : memref<56x128xf32, #tpu.memory_space<vmem>>, vector<20x1xf32>
    %68 = vector.extract_strided_slice %45 {offsets = [3, 0], sizes = [1, 128], strides = [1, 1]} : vector<10x128xf32> to vector<1x128xf32>
    %69 = vector.broadcast %67 : vector<20x1xf32> to vector<20x128xf32>
    %70 = vector.broadcast %68 : vector<1x128xf32> to vector<20x128xf32>
    %71 = arith.mulf %69, %70 : vector<20x128xf32>
    %72 = arith.addf %66, %71 : vector<20x128xf32>
    %c15_21 = arith.constant 15 : index
    %c4_22 = arith.constant 4 : index
    %73 = vector.load %arg1[%c15_21, %c4_22] : memref<56x128xf32, #tpu.memory_space<vmem>>, vector<20x1xf32>
    %74 = vector.extract_strided_slice %45 {offsets = [4, 0], sizes = [1, 128], strides = [1, 1]} : vector<10x128xf32> to vector<1x128xf32>
    %75 = vector.broadcast %73 : vector<20x1xf32> to vector<20x128xf32>
    %76 = vector.broadcast %74 : vector<1x128xf32> to vector<20x128xf32>
    %77 = arith.mulf %75, %76 : vector<20x128xf32>
    %78 = arith.addf %72, %77 : vector<20x128xf32>
    %c15_23 = arith.constant 15 : index
    %c5_24 = arith.constant 5 : index
    %79 = vector.load %arg1[%c15_23, %c5_24] : memref<56x128xf32, #tpu.memory_space<vmem>>, vector<20x1xf32>
    %80 = vector.extract_strided_slice %45 {offsets = [5, 0], sizes = [1, 128], strides = [1, 1]} : vector<10x128xf32> to vector<1x128xf32>
    %81 = vector.broadcast %79 : vector<20x1xf32> to vector<20x128xf32>
    %82 = vector.broadcast %80 : vector<1x128xf32> to vector<20x128xf32>
    %83 = arith.mulf %81, %82 : vector<20x128xf32>
    %84 = arith.addf %78, %83 : vector<20x128xf32>
    %c15_25 = arith.constant 15 : index
    %c6 = arith.constant 6 : index
    %85 = vector.load %arg1[%c15_25, %c6] : memref<56x128xf32, #tpu.memory_space<vmem>>, vector<20x1xf32>
    %86 = vector.extract_strided_slice %45 {offsets = [6, 0], sizes = [1, 128], strides = [1, 1]} : vector<10x128xf32> to vector<1x128xf32>
    %87 = vector.broadcast %85 : vector<20x1xf32> to vector<20x128xf32>
    %88 = vector.broadcast %86 : vector<1x128xf32> to vector<20x128xf32>
    %89 = arith.mulf %87, %88 : vector<20x128xf32>
    %90 = arith.addf %84, %89 : vector<20x128xf32>
    %c15_26 = arith.constant 15 : index
    %c7 = arith.constant 7 : index
    %91 = vector.load %arg1[%c15_26, %c7] : memref<56x128xf32, #tpu.memory_space<vmem>>, vector<20x1xf32>
    %92 = vector.extract_strided_slice %45 {offsets = [7, 0], sizes = [1, 128], strides = [1, 1]} : vector<10x128xf32> to vector<1x128xf32>
    %93 = vector.broadcast %91 : vector<20x1xf32> to vector<20x128xf32>
    %94 = vector.broadcast %92 : vector<1x128xf32> to vector<20x128xf32>
    %95 = arith.mulf %93, %94 : vector<20x128xf32>
    %96 = arith.addf %90, %95 : vector<20x128xf32>
    %c15_27 = arith.constant 15 : index
    %c8 = arith.constant 8 : index
    %97 = vector.load %arg1[%c15_27, %c8] : memref<56x128xf32, #tpu.memory_space<vmem>>, vector<20x1xf32>
    %98 = vector.extract_strided_slice %45 {offsets = [8, 0], sizes = [1, 128], strides = [1, 1]} : vector<10x128xf32> to vector<1x128xf32>
    %99 = vector.broadcast %97 : vector<20x1xf32> to vector<20x128xf32>
    %100 = vector.broadcast %98 : vector<1x128xf32> to vector<20x128xf32>
    %101 = arith.mulf %99, %100 : vector<20x128xf32>
    %102 = arith.addf %96, %101 : vector<20x128xf32>
    %c15_28 = arith.constant 15 : index
    %c9 = arith.constant 9 : index
    %103 = vector.load %arg1[%c15_28, %c9] : memref<56x128xf32, #tpu.memory_space<vmem>>, vector<20x1xf32>
    %104 = vector.extract_strided_slice %45 {offsets = [9, 0], sizes = [1, 128], strides = [1, 1]} : vector<10x128xf32> to vector<1x128xf32>
    %105 = vector.broadcast %103 : vector<20x1xf32> to vector<20x128xf32>
    %106 = vector.broadcast %104 : vector<1x128xf32> to vector<20x128xf32>
    %107 = arith.mulf %105, %106 : vector<20x128xf32>
    %108 = arith.addf %102, %107 : vector<20x128xf32>
    %cst_29 = arith.constant 0.000000e+00 : f32
    %109 = vector.broadcast %cst_29 : f32 to vector<20x128xf32>
    %110 = arith.maximumf %108, %109 : vector<20x128xf32>
    %c35 = arith.constant 35 : index
    %c20 = arith.constant 20 : index
    %111 = vector.load %arg1[%c35, %c20] : memref<56x128xf32, #tpu.memory_space<vmem>>, vector<5x1xf32>
    %112 = vector.shape_cast %111 : vector<5x1xf32> to vector<5x1xf32>
    %113 = vector.broadcast %112 : vector<5x1xf32> to vector<5x128xf32>
    %c35_30 = arith.constant 35 : index
    %c0_31 = arith.constant 0 : index
    %114 = vector.load %arg1[%c35_30, %c0_31] : memref<56x128xf32, #tpu.memory_space<vmem>>, vector<5x1xf32>
    %115 = vector.extract_strided_slice %110 {offsets = [0, 0], sizes = [1, 128], strides = [1, 1]} : vector<20x128xf32> to vector<1x128xf32>
    %116 = vector.broadcast %114 : vector<5x1xf32> to vector<5x128xf32>
    %117 = vector.broadcast %115 : vector<1x128xf32> to vector<5x128xf32>
    %118 = arith.mulf %116, %117 : vector<5x128xf32>
    %119 = arith.addf %113, %118 : vector<5x128xf32>
    %c35_32 = arith.constant 35 : index
    %c1_33 = arith.constant 1 : index
    %120 = vector.load %arg1[%c35_32, %c1_33] : memref<56x128xf32, #tpu.memory_space<vmem>>, vector<5x1xf32>
    %121 = vector.extract_strided_slice %110 {offsets = [1, 0], sizes = [1, 128], strides = [1, 1]} : vector<20x128xf32> to vector<1x128xf32>
    %122 = vector.broadcast %120 : vector<5x1xf32> to vector<5x128xf32>
    %123 = vector.broadcast %121 : vector<1x128xf32> to vector<5x128xf32>
    %124 = arith.mulf %122, %123 : vector<5x128xf32>
    %125 = arith.addf %119, %124 : vector<5x128xf32>
    %c35_34 = arith.constant 35 : index
    %c2_35 = arith.constant 2 : index
    %126 = vector.load %arg1[%c35_34, %c2_35] : memref<56x128xf32, #tpu.memory_space<vmem>>, vector<5x1xf32>
    %127 = vector.extract_strided_slice %110 {offsets = [2, 0], sizes = [1, 128], strides = [1, 1]} : vector<20x128xf32> to vector<1x128xf32>
    %128 = vector.broadcast %126 : vector<5x1xf32> to vector<5x128xf32>
    %129 = vector.broadcast %127 : vector<1x128xf32> to vector<5x128xf32>
    %130 = arith.mulf %128, %129 : vector<5x128xf32>
    %131 = arith.addf %125, %130 : vector<5x128xf32>
    %c35_36 = arith.constant 35 : index
    %c3_37 = arith.constant 3 : index
    %132 = vector.load %arg1[%c35_36, %c3_37] : memref<56x128xf32, #tpu.memory_space<vmem>>, vector<5x1xf32>
    %133 = vector.extract_strided_slice %110 {offsets = [3, 0], sizes = [1, 128], strides = [1, 1]} : vector<20x128xf32> to vector<1x128xf32>
    %134 = vector.broadcast %132 : vector<5x1xf32> to vector<5x128xf32>
    %135 = vector.broadcast %133 : vector<1x128xf32> to vector<5x128xf32>
    %136 = arith.mulf %134, %135 : vector<5x128xf32>
    %137 = arith.addf %131, %136 : vector<5x128xf32>
    %c35_38 = arith.constant 35 : index
    %c4_39 = arith.constant 4 : index
    %138 = vector.load %arg1[%c35_38, %c4_39] : memref<56x128xf32, #tpu.memory_space<vmem>>, vector<5x1xf32>
    %139 = vector.extract_strided_slice %110 {offsets = [4, 0], sizes = [1, 128], strides = [1, 1]} : vector<20x128xf32> to vector<1x128xf32>
    %140 = vector.broadcast %138 : vector<5x1xf32> to vector<5x128xf32>
    %141 = vector.broadcast %139 : vector<1x128xf32> to vector<5x128xf32>
    %142 = arith.mulf %140, %141 : vector<5x128xf32>
    %143 = arith.addf %137, %142 : vector<5x128xf32>
    %c35_40 = arith.constant 35 : index
    %c5_41 = arith.constant 5 : index
    %144 = vector.load %arg1[%c35_40, %c5_41] : memref<56x128xf32, #tpu.memory_space<vmem>>, vector<5x1xf32>
    %145 = vector.extract_strided_slice %110 {offsets = [5, 0], sizes = [1, 128], strides = [1, 1]} : vector<20x128xf32> to vector<1x128xf32>
    %146 = vector.broadcast %144 : vector<5x1xf32> to vector<5x128xf32>
    %147 = vector.broadcast %145 : vector<1x128xf32> to vector<5x128xf32>
    %148 = arith.mulf %146, %147 : vector<5x128xf32>
    %149 = arith.addf %143, %148 : vector<5x128xf32>
    %c35_42 = arith.constant 35 : index
    %c6_43 = arith.constant 6 : index
    %150 = vector.load %arg1[%c35_42, %c6_43] : memref<56x128xf32, #tpu.memory_space<vmem>>, vector<5x1xf32>
    %151 = vector.extract_strided_slice %110 {offsets = [6, 0], sizes = [1, 128], strides = [1, 1]} : vector<20x128xf32> to vector<1x128xf32>
    %152 = vector.broadcast %150 : vector<5x1xf32> to vector<5x128xf32>
    %153 = vector.broadcast %151 : vector<1x128xf32> to vector<5x128xf32>
    %154 = arith.mulf %152, %153 : vector<5x128xf32>
    %155 = arith.addf %149, %154 : vector<5x128xf32>
    %c35_44 = arith.constant 35 : index
    %c7_45 = arith.constant 7 : index
    %156 = vector.load %arg1[%c35_44, %c7_45] : memref<56x128xf32, #tpu.memory_space<vmem>>, vector<5x1xf32>
    %157 = vector.extract_strided_slice %110 {offsets = [7, 0], sizes = [1, 128], strides = [1, 1]} : vector<20x128xf32> to vector<1x128xf32>
    %158 = vector.broadcast %156 : vector<5x1xf32> to vector<5x128xf32>
    %159 = vector.broadcast %157 : vector<1x128xf32> to vector<5x128xf32>
    %160 = arith.mulf %158, %159 : vector<5x128xf32>
    %161 = arith.addf %155, %160 : vector<5x128xf32>
    %c35_46 = arith.constant 35 : index
    %c8_47 = arith.constant 8 : index
    %162 = vector.load %arg1[%c35_46, %c8_47] : memref<56x128xf32, #tpu.memory_space<vmem>>, vector<5x1xf32>
    %163 = vector.extract_strided_slice %110 {offsets = [8, 0], sizes = [1, 128], strides = [1, 1]} : vector<20x128xf32> to vector<1x128xf32>
    %164 = vector.broadcast %162 : vector<5x1xf32> to vector<5x128xf32>
    %165 = vector.broadcast %163 : vector<1x128xf32> to vector<5x128xf32>
    %166 = arith.mulf %164, %165 : vector<5x128xf32>
    %167 = arith.addf %161, %166 : vector<5x128xf32>
    %c35_48 = arith.constant 35 : index
    %c9_49 = arith.constant 9 : index
    %168 = vector.load %arg1[%c35_48, %c9_49] : memref<56x128xf32, #tpu.memory_space<vmem>>, vector<5x1xf32>
    %169 = vector.extract_strided_slice %110 {offsets = [9, 0], sizes = [1, 128], strides = [1, 1]} : vector<20x128xf32> to vector<1x128xf32>
    %170 = vector.broadcast %168 : vector<5x1xf32> to vector<5x128xf32>
    %171 = vector.broadcast %169 : vector<1x128xf32> to vector<5x128xf32>
    %172 = arith.mulf %170, %171 : vector<5x128xf32>
    %173 = arith.addf %167, %172 : vector<5x128xf32>
    %c35_50 = arith.constant 35 : index
    %c10_51 = arith.constant 10 : index
    %174 = vector.load %arg1[%c35_50, %c10_51] : memref<56x128xf32, #tpu.memory_space<vmem>>, vector<5x1xf32>
    %175 = vector.extract_strided_slice %110 {offsets = [10, 0], sizes = [1, 128], strides = [1, 1]} : vector<20x128xf32> to vector<1x128xf32>
    %176 = vector.broadcast %174 : vector<5x1xf32> to vector<5x128xf32>
    %177 = vector.broadcast %175 : vector<1x128xf32> to vector<5x128xf32>
    %178 = arith.mulf %176, %177 : vector<5x128xf32>
    %179 = arith.addf %173, %178 : vector<5x128xf32>
    %c35_52 = arith.constant 35 : index
    %c11 = arith.constant 11 : index
    %180 = vector.load %arg1[%c35_52, %c11] : memref<56x128xf32, #tpu.memory_space<vmem>>, vector<5x1xf32>
    %181 = vector.extract_strided_slice %110 {offsets = [11, 0], sizes = [1, 128], strides = [1, 1]} : vector<20x128xf32> to vector<1x128xf32>
    %182 = vector.broadcast %180 : vector<5x1xf32> to vector<5x128xf32>
    %183 = vector.broadcast %181 : vector<1x128xf32> to vector<5x128xf32>
    %184 = arith.mulf %182, %183 : vector<5x128xf32>
    %185 = arith.addf %179, %184 : vector<5x128xf32>
    %c35_53 = arith.constant 35 : index
    %c12 = arith.constant 12 : index
    %186 = vector.load %arg1[%c35_53, %c12] : memref<56x128xf32, #tpu.memory_space<vmem>>, vector<5x1xf32>
    %187 = vector.extract_strided_slice %110 {offsets = [12, 0], sizes = [1, 128], strides = [1, 1]} : vector<20x128xf32> to vector<1x128xf32>
    %188 = vector.broadcast %186 : vector<5x1xf32> to vector<5x128xf32>
    %189 = vector.broadcast %187 : vector<1x128xf32> to vector<5x128xf32>
    %190 = arith.mulf %188, %189 : vector<5x128xf32>
    %191 = arith.addf %185, %190 : vector<5x128xf32>
    %c35_54 = arith.constant 35 : index
    %c13 = arith.constant 13 : index
    %192 = vector.load %arg1[%c35_54, %c13] : memref<56x128xf32, #tpu.memory_space<vmem>>, vector<5x1xf32>
    %193 = vector.extract_strided_slice %110 {offsets = [13, 0], sizes = [1, 128], strides = [1, 1]} : vector<20x128xf32> to vector<1x128xf32>
    %194 = vector.broadcast %192 : vector<5x1xf32> to vector<5x128xf32>
    %195 = vector.broadcast %193 : vector<1x128xf32> to vector<5x128xf32>
    %196 = arith.mulf %194, %195 : vector<5x128xf32>
    %197 = arith.addf %191, %196 : vector<5x128xf32>
    %c35_55 = arith.constant 35 : index
    %c14 = arith.constant 14 : index
    %198 = vector.load %arg1[%c35_55, %c14] : memref<56x128xf32, #tpu.memory_space<vmem>>, vector<5x1xf32>
    %199 = vector.extract_strided_slice %110 {offsets = [14, 0], sizes = [1, 128], strides = [1, 1]} : vector<20x128xf32> to vector<1x128xf32>
    %200 = vector.broadcast %198 : vector<5x1xf32> to vector<5x128xf32>
    %201 = vector.broadcast %199 : vector<1x128xf32> to vector<5x128xf32>
    %202 = arith.mulf %200, %201 : vector<5x128xf32>
    %203 = arith.addf %197, %202 : vector<5x128xf32>
    %c35_56 = arith.constant 35 : index
    %c15_57 = arith.constant 15 : index
    %204 = vector.load %arg1[%c35_56, %c15_57] : memref<56x128xf32, #tpu.memory_space<vmem>>, vector<5x1xf32>
    %205 = vector.extract_strided_slice %110 {offsets = [15, 0], sizes = [1, 128], strides = [1, 1]} : vector<20x128xf32> to vector<1x128xf32>
    %206 = vector.broadcast %204 : vector<5x1xf32> to vector<5x128xf32>
    %207 = vector.broadcast %205 : vector<1x128xf32> to vector<5x128xf32>
    %208 = arith.mulf %206, %207 : vector<5x128xf32>
    %209 = arith.addf %203, %208 : vector<5x128xf32>
    %c35_58 = arith.constant 35 : index
    %c16 = arith.constant 16 : index
    %210 = vector.load %arg1[%c35_58, %c16] : memref<56x128xf32, #tpu.memory_space<vmem>>, vector<5x1xf32>
    %211 = vector.extract_strided_slice %110 {offsets = [16, 0], sizes = [1, 128], strides = [1, 1]} : vector<20x128xf32> to vector<1x128xf32>
    %212 = vector.broadcast %210 : vector<5x1xf32> to vector<5x128xf32>
    %213 = vector.broadcast %211 : vector<1x128xf32> to vector<5x128xf32>
    %214 = arith.mulf %212, %213 : vector<5x128xf32>
    %215 = arith.addf %209, %214 : vector<5x128xf32>
    %c35_59 = arith.constant 35 : index
    %c17 = arith.constant 17 : index
    %216 = vector.load %arg1[%c35_59, %c17] : memref<56x128xf32, #tpu.memory_space<vmem>>, vector<5x1xf32>
    %217 = vector.extract_strided_slice %110 {offsets = [17, 0], sizes = [1, 128], strides = [1, 1]} : vector<20x128xf32> to vector<1x128xf32>
    %218 = vector.broadcast %216 : vector<5x1xf32> to vector<5x128xf32>
    %219 = vector.broadcast %217 : vector<1x128xf32> to vector<5x128xf32>
    %220 = arith.mulf %218, %219 : vector<5x128xf32>
    %221 = arith.addf %215, %220 : vector<5x128xf32>
    %c35_60 = arith.constant 35 : index
    %c18 = arith.constant 18 : index
    %222 = vector.load %arg1[%c35_60, %c18] : memref<56x128xf32, #tpu.memory_space<vmem>>, vector<5x1xf32>
    %223 = vector.extract_strided_slice %110 {offsets = [18, 0], sizes = [1, 128], strides = [1, 1]} : vector<20x128xf32> to vector<1x128xf32>
    %224 = vector.broadcast %222 : vector<5x1xf32> to vector<5x128xf32>
    %225 = vector.broadcast %223 : vector<1x128xf32> to vector<5x128xf32>
    %226 = arith.mulf %224, %225 : vector<5x128xf32>
    %227 = arith.addf %221, %226 : vector<5x128xf32>
    %c35_61 = arith.constant 35 : index
    %c19 = arith.constant 19 : index
    %228 = vector.load %arg1[%c35_61, %c19] : memref<56x128xf32, #tpu.memory_space<vmem>>, vector<5x1xf32>
    %229 = vector.extract_strided_slice %110 {offsets = [19, 0], sizes = [1, 128], strides = [1, 1]} : vector<20x128xf32> to vector<1x128xf32>
    %230 = vector.broadcast %228 : vector<5x1xf32> to vector<5x128xf32>
    %231 = vector.broadcast %229 : vector<1x128xf32> to vector<5x128xf32>
    %232 = arith.mulf %230, %231 : vector<5x128xf32>
    %233 = arith.addf %227, %232 : vector<5x128xf32>
    %cst_62 = arith.constant 0.000000e+00 : f32
    %234 = vector.broadcast %cst_62 : f32 to vector<5x128xf32>
    %235 = arith.maximumf %233, %234 : vector<5x128xf32>
    %c40 = arith.constant 40 : index
    %c5_63 = arith.constant 5 : index
    %236 = vector.load %arg1[%c40, %c5_63] : memref<56x128xf32, #tpu.memory_space<vmem>>, vector<9x1xf32>
    %237 = vector.shape_cast %236 : vector<9x1xf32> to vector<9x1xf32>
    %238 = vector.broadcast %237 : vector<9x1xf32> to vector<9x128xf32>
    %c40_64 = arith.constant 40 : index
    %c0_65 = arith.constant 0 : index
    %239 = vector.load %arg1[%c40_64, %c0_65] : memref<56x128xf32, #tpu.memory_space<vmem>>, vector<9x1xf32>
    %240 = vector.extract_strided_slice %235 {offsets = [0, 0], sizes = [1, 128], strides = [1, 1]} : vector<5x128xf32> to vector<1x128xf32>
    %241 = vector.broadcast %239 : vector<9x1xf32> to vector<9x128xf32>
    %242 = vector.broadcast %240 : vector<1x128xf32> to vector<9x128xf32>
    %243 = arith.mulf %241, %242 : vector<9x128xf32>
    %244 = arith.addf %238, %243 : vector<9x128xf32>
    %c40_66 = arith.constant 40 : index
    %c1_67 = arith.constant 1 : index
    %245 = vector.load %arg1[%c40_66, %c1_67] : memref<56x128xf32, #tpu.memory_space<vmem>>, vector<9x1xf32>
    %246 = vector.extract_strided_slice %235 {offsets = [1, 0], sizes = [1, 128], strides = [1, 1]} : vector<5x128xf32> to vector<1x128xf32>
    %247 = vector.broadcast %245 : vector<9x1xf32> to vector<9x128xf32>
    %248 = vector.broadcast %246 : vector<1x128xf32> to vector<9x128xf32>
    %249 = arith.mulf %247, %248 : vector<9x128xf32>
    %250 = arith.addf %244, %249 : vector<9x128xf32>
    %c40_68 = arith.constant 40 : index
    %c2_69 = arith.constant 2 : index
    %251 = vector.load %arg1[%c40_68, %c2_69] : memref<56x128xf32, #tpu.memory_space<vmem>>, vector<9x1xf32>
    %252 = vector.extract_strided_slice %235 {offsets = [2, 0], sizes = [1, 128], strides = [1, 1]} : vector<5x128xf32> to vector<1x128xf32>
    %253 = vector.broadcast %251 : vector<9x1xf32> to vector<9x128xf32>
    %254 = vector.broadcast %252 : vector<1x128xf32> to vector<9x128xf32>
    %255 = arith.mulf %253, %254 : vector<9x128xf32>
    %256 = arith.addf %250, %255 : vector<9x128xf32>
    %c40_70 = arith.constant 40 : index
    %c3_71 = arith.constant 3 : index
    %257 = vector.load %arg1[%c40_70, %c3_71] : memref<56x128xf32, #tpu.memory_space<vmem>>, vector<9x1xf32>
    %258 = vector.extract_strided_slice %235 {offsets = [3, 0], sizes = [1, 128], strides = [1, 1]} : vector<5x128xf32> to vector<1x128xf32>
    %259 = vector.broadcast %257 : vector<9x1xf32> to vector<9x128xf32>
    %260 = vector.broadcast %258 : vector<1x128xf32> to vector<9x128xf32>
    %261 = arith.mulf %259, %260 : vector<9x128xf32>
    %262 = arith.addf %256, %261 : vector<9x128xf32>
    %c40_72 = arith.constant 40 : index
    %c4_73 = arith.constant 4 : index
    %263 = vector.load %arg1[%c40_72, %c4_73] : memref<56x128xf32, #tpu.memory_space<vmem>>, vector<9x1xf32>
    %264 = vector.extract_strided_slice %235 {offsets = [4, 0], sizes = [1, 128], strides = [1, 1]} : vector<5x128xf32> to vector<1x128xf32>
    %265 = vector.broadcast %263 : vector<9x1xf32> to vector<9x128xf32>
    %266 = vector.broadcast %264 : vector<1x128xf32> to vector<9x128xf32>
    %267 = arith.mulf %265, %266 : vector<9x128xf32>
    %268 = arith.addf %262, %267 : vector<9x128xf32>
    %c0_74 = arith.constant 0 : index
    %c0_75 = arith.constant 0 : index
    %269 = vector.load %arg3[%c0_74, %c0_75] : memref<9x128xf32, #tpu.memory_space<vmem>>, vector<9x128xf32>
    tpu.vector_store %arg3[%c0_74, %c0_75], %268 {strides = array<i32>} : memref<9x128xf32, #tpu.memory_space<vmem>>, vector<9x128xf32>,
    return
  }
  func.func @transform_0(%arg0: i32) -> (i32, i32) {
    %c0_i32 = arith.constant 0 : i32
    %c0_i32_0 = arith.constant 0 : i32
    %c0_i32_1 = arith.constant 0 : i32
    return %c0_i32, %c0_i32_0 : i32, i32
  }
  func.func @transform_1(%arg0: i32) -> (i32, i32) {
    %c0_i32 = arith.constant 0 : i32
    %c0_i32_0 = arith.constant 0 : i32
    return %c0_i32, %arg0 : i32, i32
  }
  func.func @transform_2(%arg0: i32) -> (i32, i32) {
    %c0_i32 = arith.constant 0 : i32
    %c0_i32_0 = arith.constant 0 : i32
    return %c0_i32, %arg0 : i32, i32
  }
}

</mosaic_0001>

<bundles_post_ra>
// kernel: tpu_custom_call.1
= control target key start
LH: loop header
LB: loop body
LE: loop exit
PB: predicated region body
PF: predicated region fallthrough
CT: control target
= control target key end

     0   :  { %7 = vsyncpa [#allocation3], 0  ;;  %s1141_s0 = inlined_call_operand.hbm [shape: f32[56,128], index: 0, kind: input, shape index: {}]   ;;  %s1142_s1 = inlined_call_operand.vmem [shape: f32[1,128], index: 1, kind: input, shape index: {}]   ;;  %s1143_s2 = inlined_call_operand.hbm [shape: f32[9,128], index: 2, kind: output, shape index: {}]  }
   0x1   :  { %8 = vsyncpa [#allocation4], 0  ;;  %s824_s9 = smov [#allocation2]  }
   0x2   :  { %s14_s10 = sshll.u32 %s824_s9, 4  ;;  %s15_s10 = int_to_ptr.vmem [resolvable:$true] %s14_s10 }
   0x3   :  { %s788_s11 = scalar_lea.vmem %s15_s10, 896  ;;  %p793_p1 = scmp.lt.s32.totalorder %s15_s10, %s15_s10 }
   0x4   :  { %p789_p0 = scmp.ne.s32.totalorder %s15_s10, %s788_s11  ;;  %p794_p2 = scmp.lt.s32.totalorder %s788_s11, %s788_s11 }
   0x6   :  { %p795_p3 = por %p794_p2, %p793_p1 }
   0x8   :  { %p796_p4 = pnand %p795_p3, %p789_p0 }
   0xa   :  { %799 = shalt.err (!%p796_p4)
}
   0xb   :  { %s825_s12 = smov 128   ;;  %s826_s13 = smov 8  }
   0xc   :  { %20 = dma.hbm_to_vmem [thread:$0]  %s1141_s0, 896, %s15_s10, [#allocation3], %s825_s12, %s825_s12, %s826_s13  }
   0xd   :  { %820 = dma.done.wait [#allocation3], 896  }
   0xe   :  { %821 = vsyncadd [#allocation3], 4294966400  ;;  %v827_v0 = vmov 5   ;;  %v828_v1 = vmov 0   ;;  %v46_v2 = vld [vmem:[#allocation2 + $0x5] sm:$0xff]  ;;  %v829_v6 = vmov 2   ;;  %v66_v42 = vlaneseq }
   0xf   :  { %726 = vset.pattern.permute.xlu1 %v827_v0  ;;  %725 = vset.pattern.permute.xlu0 %v828_v1  ;;  %v27_v3 = vld [vmem:[#allocation2] sm:$0x1f]  ;;  %v47_v4 = vld [vmem:[#allocation2 + $0xd] sm:$0x3]  ;;  %v830_v7 = vmov 1   ;;  %v831_v8 = vmov 3  }
  0x10   :  { %50 = vperm.xlu1 %726, %v46_v2   ;;  %34 = vperm.xlu0 %725, %v27_v3   ;;  %v872_v5 = vld [vmem:[#allocation2 + $0x1f] sm:$0xf]  ;;  %v832_v9 = vmov 6   ;;  %v833_v10 = vmov 4   ;;  %v888_v11 = vld [vmem:[#allocation2 + $0xf] sm:$0xff]  ;;  %v834_v12 = vmov 8  }
  0x11   :  { %v835_v13 = vmov 10   ;;  %v893_v14 = vld [vmem:[#allocation2 + $0x17] sm:$0xff]  ;;  %v836_v15 = vmov 9   ;;  %v905_v16 = vld [vmem:[#allocation2 + $0x23] sm:$0x1f]  ;;  %v837_v17 = vmov 7  }
  0x12   :  { %v838_v18 = vmov 13   ;;  %v839_v19 = vmov 16   ;;  %v840_v20 = vmov 19   ;;  %v934_v21 = vld [vmem:[#allocation2 + $0x28] sm:$0xff]  ;;  %v939_v22 = vld [vmem:[#allocation2 + $0x30] sm:$0x1] }
  0x13   :  { %v841_v29 = vmov 20   ;;  %v699_v43 = vld [vmem:[%s1142_s1] ss:$0 sm:$0xff]  ;;  %v992_v47 = vshrl.u32 %v66_v42, 7  ;;  %v842_v60 = vmov 11   ;;  %s848_s1 = smov [#allocation5]  }
  0x14   :  { %55 = vperm.xlu1 %726, %v47_v4   ;;  %63 = vperm.xlu0 %725, %v47_v4   ;;  %s687_s17 = sshll.u32 %s848_s1, 4  ;;  %s688_s17 = int_to_ptr.vmem [resolvable:$true] %s687_s17 }
  0x15   :  { %v998_v51 = vsub.s32 0, %v992_v47  ;;  %v1001_v52 = vsub.s32 1, %v992_v47  ;;  %v1005_v54 = vsub.s32 2, %v992_v47  ;;  %v1008_v57 = vsub.s32 3, %v992_v47  ;;  %s800_s18 = scalar_lea.vmem %s688_s17, 256  ;;  %p805_p6 = scmp.lt.s32.totalorder %s688_s17, %s688_s17 }
  0x16   :  { %v1013_v61 = vsub.s32 4, %v992_v47  ;;  %p801_p5 = scmp.ne.s32.totalorder %s688_s17, %s800_s18  ;;  %p806_p7 = scmp.lt.s32.totalorder %s800_s18, %s800_s18 }
  0x18   :  { %727 = vset.pattern.permute.xlu1 %v828_v1  ;;  %167 = vperm.xlu0 %725, %v872_v5   ;;  %p807_p8 = por %p806_p7, %p805_p6 }
  0x19   :  { %59 = vperm.xlu1 %727, %v46_v2  }
  0x1a   :  { %p808_p9 = pnand %p807_p8, %p801_p5 }
  0x1c   :  { %736 = vset.pattern.permute.xlu0 %v829_v6 }
  0x1d   :  { %728 = vset.pattern.permute.xlu1 %v830_v7  ;;  %211 = vperm.xlu0 %736, %v872_v5  }
  0x1e   :  { %75 = vperm.xlu1 %728, %v46_v2  }
  0x21   :  { %737 = vset.pattern.permute.xlu0 %v831_v8 }
  0x22   :  { %729 = vset.pattern.permute.xlu1 %v829_v6  ;;  %107 = vperm.xlu0 %737, %v46_v2  }
  0x23   :  { %91 = vperm.xlu1 %729, %v46_v2  }
  0x26   :  { %233 = vperm.xlu0 %737, %v872_v5  }
  0x27   :  { %95 = vperm.xlu1 %729, %v47_v4  }
  0x2a   :  { %741 = vset.pattern.permute.xlu0 %v827_v0 }
  0x2b   :  { %730 = vset.pattern.permute.xlu1 %v831_v8  ;;  %277 = vperm.xlu0 %741, %v872_v5  }
  0x2c   :  { %111 = vperm.xlu1 %730, %v47_v4  }
  0x2f   :  { %743 = vset.pattern.permute.xlu0 %v832_v9 }
  0x30   :  { %731 = vset.pattern.permute.xlu1 %v833_v10  ;;  %299 = vperm.xlu0 %743, %v872_v5  }
  0x31   :  { %123 = vperm.xlu1 %731, %v46_v2  }
  0x34   :  { %746 = vset.pattern.permute.xlu0 %v834_v12 }
  0x35   :  { %732 = vset.pattern.permute.xlu1 %v835_v13  ;;  %343 = vperm.xlu0 %746, %v872_v5  }
  0x36   :  { %145 = vperm.xlu1 %732, %v888_v11  }
  0x39   :  { %748 = vset.pattern.permute.xlu0 %v836_v15 }
  0x3a   :  { %150 = vperm.xlu1 %732, %v893_v14   ;;  %365 = vperm.xlu0 %748, %v872_v5  }
  0x3e   :  { %733 = vset.pattern.permute.xlu1 %v828_v1  ;;  %749 = vset.pattern.permute.xlu0 %v830_v7 }
  0x3f   :  { %159 = vperm.xlu1 %733, %v888_v11   ;;  %30 = vperm.xlu0 %749, %v27_v3  }
  0x43   :  { %163 = vperm.xlu1 %733, %v893_v14   ;;  %79 = vperm.xlu0 %749, %v47_v4  }
  0x47   :  { %734 = vset.pattern.permute.xlu1 %v830_v7  ;;  %189 = vperm.xlu0 %749, %v872_v5  }
  0x48   :  { %181 = vperm.xlu1 %734, %v888_v11  }
  0x4b   :  { %398 = vperm.xlu0 %749, %v905_v16  }
  0x4c   :  { %185 = vperm.xlu1 %734, %v893_v14  }
  0x4f   :  { %752 = vset.pattern.permute.xlu0 %v833_v10 }
  0x50   :  { %735 = vset.pattern.permute.xlu1 %v829_v6  ;;  %127 = vperm.xlu0 %752, %v47_v4  }
  0x51   :  { %203 = vperm.xlu1 %735, %v888_v11  }
  0x54   :  { %255 = vperm.xlu0 %752, %v872_v5  }
  0x55   :  { %207 = vperm.xlu1 %735, %v893_v14  }
  0x58   :  { %428 = vperm.xlu0 %752, %v905_v16  }
  0x59   :  { %738 = vset.pattern.permute.xlu1 %v831_v8 }
  0x5a   :  { %225 = vperm.xlu1 %738, %v888_v11  }
  0x5c   :  { %755 = vset.pattern.permute.xlu0 %v837_v17 }
  0x5d   :  { %321 = vperm.xlu0 %755, %v872_v5  }
  0x5e   :  { %229 = vperm.xlu1 %738, %v893_v14  }
  0x61   :  { %458 = vperm.xlu0 %755, %v905_v16  }
  0x62   :  { %739 = vset.pattern.permute.xlu1 %v833_v10 }
  0x63   :  { %247 = vperm.xlu1 %739, %v888_v11  }
  0x65   :  { %758 = vset.pattern.permute.xlu0 %v835_v13 }
  0x66   :  { %155 = vperm.xlu0 %758, %v872_v5  }
  0x67   :  { %251 = vperm.xlu1 %739, %v893_v14  }
  0x6a   :  { %488 = vperm.xlu0 %758, %v905_v16  }
  0x6b   :  { %740 = vset.pattern.permute.xlu1 %v827_v0 }
  0x6c   :  { %269 = vperm.xlu1 %740, %v888_v11  }
  0x6e   :  { %763 = vset.pattern.permute.xlu0 %v838_v18 }
  0x6f   :  { %518 = vperm.xlu0 %763, %v905_v16  }
  0x70   :  { %273 = vperm.xlu1 %740, %v893_v14  }
  0x73   :  { %766 = vset.pattern.permute.xlu0 %v839_v19  ;;  %v843_v19 = vmov 12  }
  0x74   :  { %742 = vset.pattern.permute.xlu1 %v832_v9  ;;  %548 = vperm.xlu0 %766, %v905_v16  }
  0x75   :  { %291 = vperm.xlu1 %742, %v888_v11  }
  0x78   :  { %769 = vset.pattern.permute.xlu0 %v840_v20 }
  0x79   :  { %295 = vperm.xlu1 %742, %v893_v14   ;;  %578 = vperm.xlu0 %769, %v905_v16  }
  0x7d   :  { %744 = vset.pattern.permute.xlu1 %v837_v17  ;;  %771 = vset.pattern.permute.xlu0 %v827_v0 }
  0x7e   :  { %313 = vperm.xlu1 %744, %v888_v11   ;;  %592 = vperm.xlu0 %771, %v934_v21  }
  0x82   :  { %317 = vperm.xlu1 %744, %v893_v14   ;;  %774 = vset.pattern.permute.xlu0 %v830_v7 }
  0x83   :  { %621 = vperm.xlu0 %774, %v939_v22  }
  0x86   :  { %745 = vset.pattern.permute.xlu1 %v834_v12 }
  0x87   :  { %335 = vperm.xlu1 %745, %v888_v11   ;;  %776 = vset.pattern.permute.xlu0 %v831_v8 }
  0x88   :  { %649 = vperm.xlu0 %776, %v934_v21  }
  0x8b   :  { %339 = vperm.xlu1 %745, %v893_v14   ;;  %v949_v23 = vpop.permute.xlu1 %50  ;;  %v35_v24 = vpop.permute.xlu0 %34 }
  0x8c   :  { %779 = vset.pattern.permute.xlu0 %v833_v10  ;;  %v43_v46 = vmul.f32 %v699_v43, %v35_v24 }
  0x8d   :  { %669 = vperm.xlu0 %779, %v939_v22  }
  0x8f   :  { %747 = vset.pattern.permute.xlu1 %v836_v15  ;;  %v954_v25 = vpop.permute.xlu1 %55  ;;  %v64_v26 = vpop.permute.xlu0 %63 }
  0x90   :  { %357 = vperm.xlu1 %747, %v888_v11  }
  0x93   :  { %v957_v27 = vpop.permute.xlu0 %167 }
  0x94   :  { %361 = vperm.xlu1 %747, %v893_v14   ;;  %v60_v28 = vpop.permute.xlu1 %59 }
  0x98   :  { %750 = vset.pattern.permute.xlu1 %v841_v29  ;;  %v960_v30 = vpop.permute.xlu0 %211 }
  0x99   :  { %384 = vperm.xlu1 %750, %v905_v16   ;;  %v76_v31 = vpop.permute.xlu1 %75 }
  0x9d   :  { %751 = vset.pattern.permute.xlu1 %v828_v1  ;;  %v108_v32 = vpop.permute.xlu0 %107 }
  0x9e   :  { %388 = vperm.xlu1 %751, %v905_v16   ;;  %v92_v33 = vpop.permute.xlu1 %91 }
  0xa1   :  { %v965_v34 = vpop.permute.xlu0 %233 }
  0xa2   :  { %753 = vset.pattern.permute.xlu1 %v829_v6  ;;  %v96_v35 = vpop.permute.xlu1 %95 }
  0xa3   :  { %408 = vperm.xlu1 %753, %v905_v16  }
  0xa6   :  { %v969_v36 = vpop.permute.xlu0 %277 }
  0xa7   :  { %754 = vset.pattern.permute.xlu1 %v831_v8  ;;  %v112_v37 = vpop.permute.xlu1 %111 }
  0xa8   :  { %418 = vperm.xlu1 %754, %v905_v16  }
  0xab   :  { %v973_v38 = vpop.permute.xlu0 %299 }
  0xac   :  { %756 = vset.pattern.permute.xlu1 %v827_v0  ;;  %v124_v39 = vpop.permute.xlu1 %123 }
  0xad   :  { %438 = vperm.xlu1 %756, %v905_v16  }
  0xb0   :  { %v977_v40 = vpop.permute.xlu0 %343 }
  0xb1   :  { %757 = vset.pattern.permute.xlu1 %v832_v9  ;;  %v980_v41 = vpop.permute.xlu1 %145 }
  0xb2   :  { %448 = vperm.xlu1 %757, %v905_v16  }
  0xb5   :  { %v986_v44 = vpop.permute.xlu1 %150  ;;  %v988_v45 = vpop.permute.xlu0 %365 }
  0xb6   :  { %759 = vset.pattern.permute.xlu1 %v834_v12 }
  0xb7   :  { %468 = vperm.xlu1 %759, %v905_v16  }
  0xba   :  { %v994_v48 = vpop.permute.xlu1 %159  ;;  %v31_v49 = vpop.permute.xlu0 %30 }
  0xbb   :  { %v44_v50 = vadd.f32 %v43_v46, %v31_v49  ;;  %760 = vset.pattern.permute.xlu1 %v836_v15 }
  0xbc   :  { %478 = vperm.xlu1 %760, %v905_v16  }
  0xbd   :  { %v45_v53 = vmax.f32 %v44_v50, 0.0 }
  0xbe   :  { %v164_v55 = vpop.permute.xlu1 %163  ;;  %v80_v56 = vpop.permute.xlu0 %79 }
  0xbf   :  { %v69_v58 = vrot.slane %v45_v53, %v998_v51  ;;  %v85_v59 = vrot.slane %v45_v53, %v1001_v52  ;;  %v101_v63 = vrot.slane %v45_v53, %v1005_v54  ;;  %v117_v11 = vrot.slane %v45_v53, %v1008_v57 }
  0xc0   :  { %761 = vset.pattern.permute.xlu1 %v842_v60  ;;  %v133_v18 = vrot.slane %v45_v53, %v1013_v61  ;;  %v1030_v53 = vsub.s32 5, %v992_v47 }
  0xc1   :  { %v70_v62 = vmul.f32 %v69_v58, %v60_v28  ;;  %498 = vperm.xlu1 %761, %v905_v16   ;;  %v71_v2 = vmul.f32 %v69_v58, %v64_v26  ;;  %v87_v3 = vmul.f32 %v85_v59, %v80_v56  ;;  %v86_v9 = vmul.f32 %v85_v59, %v76_v31 }
  0xc2   :  { %v1017_v4 = vpop.permute.xlu0 %189  ;;  %v102_v15 = vmul.f32 %v101_v63, %v92_v33  ;;  %v118_v17 = vmul.f32 %v117_v11, %v108_v32  ;;  %v103_v24 = vmul.f32 %v101_v63, %v96_v35  ;;  %v119_v31 = vmul.f32 %v117_v11, %v112_v37 }
  0xc3   :  { %v72_v5 = vadd.f32 %v70_v62, %v949_v23  ;;  %v182_v12 = vpop.permute.xlu1 %181  ;;  %v73_v13 = vadd.f32 %v71_v2, %v954_v25  ;;  %v134_v43 = vmul.f32 %v133_v18, %v124_v39  ;;  %v844_v25 = vmov 14  }
  0xc4   :  { %v845_v59 = vmov 15  }
  0xc5   :  { %v88_v14 = vadd.f32 %v86_v9, %v72_v5  ;;  %762 = vset.pattern.permute.xlu1 %v843_v19  ;;  %v89_v20 = vadd.f32 %v87_v3, %v73_v13  ;;  %v1042_v3 = vsub.s32 6, %v992_v47 }
  0xc6   :  { %508 = vperm.xlu1 %762, %v905_v16   ;;  %v1024_v26 = vpop.permute.xlu0 %398 }
  0xc7   :  { %v104_v23 = vadd.f32 %v102_v15, %v88_v14  ;;  %v186_v28 = vpop.permute.xlu1 %185  ;;  %v105_v29 = vadd.f32 %v103_v24, %v89_v20 }
  0xc9   :  { %v120_v42 = vadd.f32 %v118_v17, %v104_v23  ;;  %v121_v33 = vadd.f32 %v119_v31, %v105_v29  ;;  %v846_v23 = vmov 17  }
  0xca   :  { %764 = vset.pattern.permute.xlu1 %v844_v25 }
  0xcb   :  { %v136_v32 = vadd.f32 %v134_v43, %v120_v42  ;;  %528 = vperm.xlu1 %764, %v905_v16   ;;  %v128_v46 = vpop.permute.xlu0 %127 }
  0xcc   :  { %v135_v49 = vmul.f32 %v133_v18, %v128_v46  ;;  %v204_v50 = vpop.permute.xlu1 %203 }
  0xcd   :  { %v1027_v35 = vmax.f32 %v136_v32, 0.0 }
  0xce   :  { %v137_v56 = vadd.f32 %v135_v49, %v121_v33 }
  0xcf   :  { %v173_v37 = vrot.slane %v1027_v35, %v998_v51  ;;  %v195_v39 = vrot.slane %v1027_v35, %v1001_v52  ;;  %v217_v58 = vrot.slane %v1027_v35, %v1005_v54  ;;  %765 = vset.pattern.permute.xlu1 %v845_v59  ;;  %v256_v60 = vpop.permute.xlu0 %255  ;;  %v239_v2 = vrot.slane %v1027_v35, %v1008_v57 }
  0xd0   :  { %v139_v62 = vmax.f32 %v137_v56, 0.0  ;;  %538 = vperm.xlu1 %765, %v905_v16   ;;  %v208_v63 = vpop.permute.xlu1 %207  ;;  %v283_v13 = vrot.slane %v1027_v35, %v1030_v53 }
  0xd1   :  { %v175_v5 = vmul.f32 %v173_v37, %v164_v55  ;;  %v174_v9 = vmul.f32 %v173_v37, %v994_v48  ;;  %v196_v11 = vmul.f32 %v195_v39, %v182_v12  ;;  %v197_v14 = vmul.f32 %v195_v39, %v186_v28 }
  0xd2   :  { %v1048_v15 = vrot.slane %v139_v62, %v998_v51  ;;  %v1051_v17 = vrot.slane %v139_v62, %v1001_v52  ;;  %v218_v18 = vmul.f32 %v217_v58, %v204_v50  ;;  %v219_v24 = vmul.f32 %v217_v58, %v208_v63 }
  0xd3   :  { %v178_v19 = vadd.f32 %v175_v5, %v986_v44  ;;  %v177_v20 = vadd.f32 %v174_v9, %v980_v41  ;;  %v1055_v55 = vpop.permute.xlu0 %428  ;;  %v176_v28 = vmul.f32 %v173_v37, %v957_v27  ;;  %v220_v29 = vmul.f32 %v217_v58, %v960_v30 }
  0xd4   :  { %v1059_v48 = vmul.f32 %v1048_v15, %v977_v40  ;;  %v1063_v12 = vmul.f32 %v1051_v17, %v988_v45  ;;  %767 = vset.pattern.permute.xlu1 %v846_v23  ;;  %v242_v42 = vmul.f32 %v239_v2, %v965_v34  ;;  %v286_v40 = vmul.f32 %v283_v13, %v969_v36 }
  0xd5   :  { %v199_v44 = vadd.f32 %v196_v11, %v177_v20  ;;  %v200_v31 = vadd.f32 %v197_v14, %v178_v19  ;;  %558 = vperm.xlu1 %767, %v905_v16   ;;  %v226_v41 = vpop.permute.xlu1 %225  ;;  %v305_v45 = vrot.slane %v1027_v35, %v1042_v3  ;;  %v847_v30 = vmov 18  }
  0xd6   :  { %v240_v43 = vmul.f32 %v239_v2, %v226_v41  ;;  %v261_v36 = vrot.slane %v1027_v35, %v1013_v61  ;;  %v198_v62 = vmul.f32 %v195_v39, %v1017_v4 }
  0xd7   :  { %v221_v25 = vadd.f32 %v218_v18, %v199_v44  ;;  %v222_v33 = vadd.f32 %v219_v24, %v200_v31  ;;  %v308_v27 = vmul.f32 %v305_v45, %v973_v38  ;;  %v1084_v18 = vsub.s32 7, %v992_v47 }
  0xd8   :  { %v322_v32 = vpop.permute.xlu0 %321 }
  0xd9   :  { %v243_v46 = vadd.f32 %v240_v43, %v221_v25  ;;  %768 = vset.pattern.permute.xlu1 %v847_v30  ;;  %v230_v49 = vpop.permute.xlu1 %229  ;;  %v327_v23 = vrot.slane %v1027_v35, %v1084_v18 }
  0xda   :  { %v241_v50 = vmul.f32 %v239_v2, %v230_v49  ;;  %568 = vperm.xlu1 %768, %v905_v16  }
  0xdc   :  { %v244_v56 = vadd.f32 %v241_v50, %v222_v33  ;;  %v1074_v34 = vpop.permute.xlu0 %458 }
  0xde   :  { %770 = vset.pattern.permute.xlu1 %v828_v1  ;;  %v248_v37 = vpop.permute.xlu1 %247  ;;  %v264_v1 = vmul.f32 %v261_v36, %v256_v60 }
  0xdf   :  { %v262_v58 = vmul.f32 %v261_v36, %v248_v37  ;;  %601 = vperm.xlu1 %770, %v934_v21  }
  0xe1   :  { %v265_v38 = vadd.f32 %v262_v58, %v243_v46  ;;  %v156_v59 = vpop.permute.xlu0 %155 }
  0xe2   :  { %v179_v63 = vadd.f32 %v176_v28, %v156_v59  ;;  %v252_v2 = vpop.permute.xlu1 %251 }
  0xe3   :  { %v263_v5 = vmul.f32 %v261_v36, %v252_v2  ;;  %605 = vperm.xlu1 %770, %v939_v22  }
  0xe4   :  { %v201_v16 = vadd.f32 %v198_v62, %v179_v63 }
  0xe5   :  { %v266_v9 = vadd.f32 %v263_v5, %v244_v56 }
  0xe6   :  { %v223_v11 = vadd.f32 %v220_v29, %v201_v16 }
  0xe7   :  { %772 = vset.pattern.permute.xlu1 %v827_v0  ;;  %v270_v14 = vpop.permute.xlu1 %269  ;;  %v330_v0 = vmul.f32 %v327_v23, %v322_v32 }
  0xe8   :  { %v245_v19 = vadd.f32 %v242_v42, %v223_v11  ;;  %v284_v20 = vmul.f32 %v283_v13, %v270_v14  ;;  %597 = vperm.xlu1 %772, %v939_v22  }
  0xea   :  { %v267_v4 = vadd.f32 %v264_v1, %v245_v19  ;;  %v287_v39 = vadd.f32 %v284_v20, %v265_v38 }
  0xeb   :  { %v274_v24 = vpop.permute.xlu1 %273 }
  0xec   :  { %v289_v28 = vadd.f32 %v286_v40, %v267_v4  ;;  %v285_v44 = vmul.f32 %v283_v13, %v274_v24  ;;  %773 = vset.pattern.permute.xlu1 %v830_v7 }
  0xed   :  { %617 = vperm.xlu1 %773, %v934_v21  }
  0xee   :  { %v288_v60 = vadd.f32 %v285_v44, %v266_v9  ;;  %v311_v47 = vadd.f32 %v308_v27, %v289_v28 }
  0xf0   :  { %v292_v29 = vpop.permute.xlu1 %291  ;;  %v333_v31 = vadd.f32 %v330_v0, %v311_v47 }
  0xf1   :  { %v306_v41 = vmul.f32 %v305_v45, %v292_v29  ;;  %775 = vset.pattern.permute.xlu1 %v829_v6 }
  0xf2   :  { %633 = vperm.xlu1 %775, %v934_v21   ;;  %v355_v42 = vadd.f32 %v1059_v48, %v333_v31 }
  0xf3   :  { %v309_v43 = vadd.f32 %v306_v41, %v287_v39 }
  0xf4   :  { %v296_v35 = vpop.permute.xlu1 %295  ;;  %v1095_v13 = vadd.f32 %v1063_v12, %v355_v42 }
  0xf5   :  { %v307_v7 = vmul.f32 %v305_v45, %v296_v35 }
  0xf6   :  { %637 = vperm.xlu1 %775, %v939_v22  }
  0xf7   :  { %v310_v40 = vadd.f32 %v307_v7, %v288_v60 }
  0xf9   :  { %v314_v25 = vpop.permute.xlu1 %313 }
  0xfa   :  { %v328_v33 = vmul.f32 %v327_v23, %v314_v25  ;;  %777 = vset.pattern.permute.xlu1 %v831_v8 }
  0xfb   :  { %653 = vperm.xlu1 %777, %v939_v22  }
  0xfc   :  { %v331_v6 = vadd.f32 %v328_v33, %v309_v43 }
  0xfd   :  { %v318_v32 = vpop.permute.xlu1 %317 }
  0xfe   :  { %v329_v27 = vmul.f32 %v327_v23, %v318_v32 }
  0xff   :  { %778 = vset.pattern.permute.xlu1 %v833_v10 }
 0x100   :  { %v332_v48 = vadd.f32 %v329_v27, %v310_v40  ;;  %665 = vperm.xlu1 %778, %v934_v21   ;;  %v489_v27 = vpop.permute.xlu0 %488 }
 0x102   :  { %v336_v12 = vpop.permute.xlu1 %335 }
 0x103   :  { %v350_v45 = vmul.f32 %v1048_v15, %v336_v12 }
 0x105   :  { %v353_v46 = vadd.f32 %v350_v45, %v331_v6 }
 0x106   :  { %v340_v30 = vpop.permute.xlu1 %339 }
 0x107   :  { %v351_v49 = vmul.f32 %v1048_v15, %v340_v30 }
 0x109   :  { %v354_v50 = vadd.f32 %v351_v49, %v332_v48 }
 0x10b   :  { %v358_v56 = vpop.permute.xlu1 %357 }
 0x10c   :  { %v372_v8 = vmul.f32 %v1051_v17, %v358_v56 }
 0x10e   :  { %v375_v22 = vadd.f32 %v372_v8, %v353_v46 }
 0x10f   :  { %v362_v36 = vpop.permute.xlu1 %361 }
 0x110   :  { %v373_v37 = vmul.f32 %v1051_v17, %v362_v36  ;;  %v378_v10 = vmax.f32 %v375_v22, 0.0  ;;  %v519_v36 = vpop.permute.xlu0 %518 }
 0x112   :  { %v376_v58 = vadd.f32 %v373_v37, %v354_v50  ;;  %v394_v21 = vrot.slane %v378_v10, %v998_v51  ;;  %v404_v63 = vrot.slane %v378_v10, %v1001_v52  ;;  %v414_v16 = vrot.slane %v378_v10, %v1005_v54 }
 0x113   :  { %v424_v14 = vrot.slane %v378_v10, %v1008_v57  ;;  %v434_v20 = vrot.slane %v378_v10, %v1013_v61  ;;  %v444_v23 = vrot.slane %v378_v10, %v1030_v53  ;;  %v464_v0 = vrot.slane %v378_v10, %v1084_v18 }
 0x114   :  { %v385_v38 = vpop.permute.xlu1 %384  ;;  %v405_v15 = vmul.f32 %v404_v63, %v1024_v26  ;;  %v454_v26 = vrot.slane %v378_v10, %v1042_v3  ;;  %v379_v60 = vmax.f32 %v376_v58, 0.0 }
 0x115   :  { %v435_v24 = vmul.f32 %v434_v20, %v1055_v55  ;;  %v465_v42 = vmul.f32 %v464_v0, %v1074_v34 }
 0x116   :  { %v474_v43 = vrot.slane %v379_v60, %v998_v51  ;;  %v484_v25 = vrot.slane %v379_v60, %v1001_v52  ;;  %v494_v33 = vrot.slane %v379_v60, %v1005_v54  ;;  %v504_v45 = vrot.slane %v379_v60, %v1008_v57 }
 0x117   :  { %v514_v50 = vrot.slane %v379_v60, %v1013_v61  ;;  %v524_v56 = vrot.slane %v379_v60, %v1030_v53  ;;  %v534_v10 = vrot.slane %v379_v60, %v1042_v3  ;;  %v549_v53 = vpop.permute.xlu0 %548 }
 0x118   :  { %v495_v12 = vmul.f32 %v494_v33, %v489_v27 }
 0x119   :  { %v389_v59 = vpop.permute.xlu1 %388  ;;  %v525_v58 = vmul.f32 %v524_v56, %v519_v36 }
 0x11a   :  { %v395_v62 = vmul.f32 %v394_v21, %v389_v59 }
 0x11c   :  { %v396_v2 = vadd.f32 %v395_v62, %v385_v38  ;;  %v380_v38 = vmax.f32 %v1095_v13, 0.0 }
 0x11e   :  { %v409_v5 = vpop.permute.xlu1 %408  ;;  %v406_v9 = vadd.f32 %v405_v15, %v396_v2  ;;  %v554_v2 = vrot.slane %v380_v38, %v998_v51  ;;  %v584_v13 = vrot.slane %v380_v38, %v1008_v57  ;;  %v574_v20 = vrot.slane %v380_v38, %v1005_v54 }
 0x11f   :  { %v415_v11 = vmul.f32 %v414_v16, %v409_v5  ;;  %v544_v5 = vrot.slane %v379_v60, %v1084_v18 }
 0x121   :  { %v416_v1 = vadd.f32 %v415_v11, %v406_v9  ;;  %v555_v9 = vmul.f32 %v554_v2, %v549_v53 }
 0x123   :  { %v419_v17 = vpop.permute.xlu1 %418 }
 0x124   :  { %v425_v19 = vmul.f32 %v424_v14, %v419_v17  ;;  %v564_v14 = vrot.slane %v380_v38, %v1001_v52 }
 0x126   :  { %v426_v4 = vadd.f32 %v425_v19, %v416_v1 }
 0x128   :  { %v439_v39 = vpop.permute.xlu1 %438  ;;  %v436_v28 = vadd.f32 %v435_v24, %v426_v4  ;;  %v579_v4 = vpop.permute.xlu0 %578 }
 0x129   :  { %v445_v44 = vmul.f32 %v444_v23, %v439_v39  ;;  %v585_v23 = vmul.f32 %v584_v13, %v579_v4 }
 0x12b   :  { %v446_v29 = vadd.f32 %v445_v44, %v436_v28 }
 0x12c   :  { %v593_v60 = vpop.permute.xlu0 %592 }
 0x12d   :  { %v449_v47 = vpop.permute.xlu1 %448 }
 0x12e   :  { %v455_v31 = vmul.f32 %v454_v26, %v449_v47 }
 0x130   :  { %v456_v41 = vadd.f32 %v455_v31, %v446_v29  ;;  %v622_v31 = vpop.permute.xlu0 %621 }
 0x132   :  { %v469_v35 = vpop.permute.xlu1 %468  ;;  %v466_v7 = vadd.f32 %v465_v42, %v456_v41 }
 0x133   :  { %v475_v55 = vmul.f32 %v474_v43, %v469_v35 }
 0x135   :  { %v476_v40 = vadd.f32 %v475_v55, %v466_v7  ;;  %v650_v55 = vpop.permute.xlu0 %649 }
 0x137   :  { %v479_v6 = vpop.permute.xlu1 %478 }
 0x138   :  { %v485_v32 = vmul.f32 %v484_v25, %v479_v6 }
 0x13a   :  { %v486_v48 = vadd.f32 %v485_v32, %v476_v40 }
 0x13c   :  { %v499_v46 = vpop.permute.xlu1 %498  ;;  %v496_v30 = vadd.f32 %v495_v12, %v486_v48 }
 0x13d   :  { %v505_v34 = vmul.f32 %v504_v45, %v499_v46 }
 0x13f   :  { %v506_v49 = vadd.f32 %v505_v34, %v496_v30  ;;  %v670_v30 = vpop.permute.xlu0 %669 }
 0x141   :  { %v509_v8 = vpop.permute.xlu1 %508 }
 0x142   :  { %v515_v22 = vmul.f32 %v514_v50, %v509_v8 }
 0x144   :  { %v516_v37 = vadd.f32 %v515_v22, %v506_v49 }
 0x146   :  { %v529_v21 = vpop.permute.xlu1 %528  ;;  %v526_v59 = vadd.f32 %v525_v58, %v516_v37 }
 0x147   :  { %v535_v62 = vmul.f32 %v534_v10, %v529_v21 }
 0x149   :  { %v536_v63 = vadd.f32 %v535_v62, %v526_v59 }
 0x14b   :  { %v539_v15 = vpop.permute.xlu1 %538 }
 0x14c   :  { %v545_v16 = vmul.f32 %v544_v5, %v539_v15 }
 0x14e   :  { %v546_v11 = vadd.f32 %v545_v16, %v536_v63 }
 0x150   :  { %v559_v17 = vpop.permute.xlu1 %558  ;;  %v556_v1 = vadd.f32 %v555_v9, %v546_v11 }
 0x151   :  { %v565_v3 = vmul.f32 %v564_v14, %v559_v17 }
 0x153   :  { %v566_v19 = vadd.f32 %v565_v3, %v556_v1 }
 0x155   :  { %v569_v39 = vpop.permute.xlu1 %568 }
 0x156   :  { %v575_v24 = vmul.f32 %v574_v20, %v569_v39 }
 0x158   :  { %v576_v18 = vadd.f32 %v575_v24, %v566_v19 }
 0x15a   :  { %v586_v28 = vadd.f32 %v585_v23, %v576_v18  ;;  %v602_v44 = vpop.permute.xlu1 %601 }
 0x15c   :  { %v587_v47 = vmax.f32 %v586_v28, 0.0 }
 0x15e   :  { %v606_v26 = vpop.permute.xlu1 %605  ;;  %v611_v41 = vrot.slane %v587_v47, %v998_v51  ;;  %v627_v43 = vrot.slane %v587_v47, %v1001_v52  ;;  %v643_v25 = vrot.slane %v587_v47, %v1005_v54  ;;  %v659_v45 = vrot.slane %v587_v47, %v1008_v57 }
 0x15f   :  { %v675_v46 = vrot.slane %v587_v47, %v1013_v61 }
 0x160   :  { %v613_v35 = vmul.f32 %v611_v41, %v606_v26  ;;  %v612_v7 = vmul.f32 %v611_v41, %v602_v44  ;;  %v629_v32 = vmul.f32 %v627_v43, %v622_v31  ;;  %v660_v54 = vmul.f32 %v659_v45, %v650_v55 }
 0x161   :  { %v677_v8 = vmul.f32 %v675_v46, %v670_v30 }
 0x162   :  { %v614_v48 = vadd.f32 %v612_v7, %v593_v60 }
 0x163   :  { %v598_v0 = vpop.permute.xlu1 %597 }
 0x164   :  { %v615_v40 = vadd.f32 %v613_v35, %v598_v0 }
 0x166   :  { %v631_v51 = vadd.f32 %v629_v32, %v615_v40 }
 0x168   :  { %v618_v29 = vpop.permute.xlu1 %617 }
 0x169   :  { %v628_v6 = vmul.f32 %v627_v43, %v618_v29 }
 0x16b   :  { %v630_v34 = vadd.f32 %v628_v6, %v614_v48 }
 0x16d   :  { %v634_v42 = vpop.permute.xlu1 %633 }
 0x16e   :  { %v644_v12 = vmul.f32 %v643_v25, %v634_v42 }
 0x170   :  { %v646_v56 = vadd.f32 %v644_v12, %v630_v34 }
 0x171   :  { %v638_v33 = vpop.permute.xlu1 %637 }
 0x172   :  { %v645_v27 = vmul.f32 %v643_v25, %v638_v33  ;;  %v662_v58 = vadd.f32 %v660_v54, %v646_v56 }
 0x174   :  { %v647_v49 = vadd.f32 %v645_v27, %v631_v51 }
 0x176   :  { %v654_v52 = vpop.permute.xlu1 %653 }
 0x177   :  { %v661_v50 = vmul.f32 %v659_v45, %v654_v52 }
 0x179   :  { %v663_v22 = vadd.f32 %v661_v50, %v647_v49 }
 0x17b   :  { %v679_v36 = vadd.f32 %v677_v8, %v663_v22  ;;  %v666_v37 = vpop.permute.xlu1 %665 }
 0x17c   :  { %v676_v10 = vmul.f32 %v675_v46, %v666_v37 }
 0x17d   :  { %681 = vst [vmem:[#allocation5 + $0x8] sm:$0x1] %v679_v36 }
 0x17e   :  { %v678_v57 = vadd.f32 %v676_v10, %v662_v58 }
 0x180   :  { %680 = vst [vmem:[#allocation5] sm:$0xff] %v678_v57 }
 0x181   :  { %811 = shalt.err (!%p808_p9)
}
 0x182   :  { %693 = dma.vmem_to_hbm [thread:$0]  %s688_s17, 256, %s1143_s2, [#allocation4], %s825_s12, %s825_s12, %s826_s13  }
 0x183   :  { %822 = dma.done.wait [#allocation4], 256  }
 0x184   :  { %823 = vsyncadd [#allocation4], 4294967040 }
 0x185   :  { %697 = vsyncpa [#allocation3], 1 }
 0x186   :  { %698 = vsyncpa [#allocation4], 1 }

</bundles_post_ra>
